<compile_context>
chip_gen: v5e
topology: v5e:2x2
jax: 0.10.0
libtpu: 0.0.40
codegen_flags: <defaults>
</compile_context>

<pallas_src>
import functools
import math

import jax
import jax.numpy as jnp
from jax.experimental import pallas as pl
from jax.experimental.pallas import tpu as pltpu


def _siam_invar_partial_kernel(a_ref, b_ref, out_ref, *, m):
    # Grid: (split, step). The output block depends only on `split`, so it is
    # resident in VMEM across the sequential `step` (reduction) axis.
    i = pl.program_id(1)

    @pl.when(i == 0)
    def _():
        out_ref[...] = jnp.zeros_like(out_ref)

    a = a_ref[...]                                    # (tb, D) f32
    b = b_ref[...]                                    # (tb, D) f32
    hinge = jnp.maximum(jnp.float32(m) + (a - b), 0.0)  # VPU elementwise

    tb, d = hinge.shape
    # Fold sublane-groups onto the (8, D) accumulator: pure vreg adds (VPU),
    # no cross-lane XLU work and no scalar read-modify-write per step.
    partial = hinge.reshape(tb // 8, 8, d).sum(axis=0)   # (8, D)
    out_ref[0] += partial


def siam_invar_loss(logits, m, *, tb=1024):
    """logits: (2, B, D) float32. Returns scalar mean(max(m + (l0 - l1), 0))."""
    two, B, D = logits.shape
    assert two == 2
    assert B % 8 == 0, "B must be a multiple of 8 (sublane tiling)"
    assert D % 128 == 0, "D must be a multiple of 128 (lane tiling)"

    # --- tile selection -----------------------------------------------------
    # Cap the per-input block at ~4 MiB so 2 inputs x 2 pipeline buffers stay
    # comfortably inside every generation's scoped VMEM (incl. v7x 64 MiB).
    tb = max(8, (int(tb) // 8) * 8)
    tb_cap = max(8, ((4 * 1024 * 1024) // (D * 4)) // 8 * 8)
    tb = min(tb, tb_cap)
    tb = math.gcd(B, tb)          # divides B; stays a multiple of 8

    total_steps = B // tb
    # Split the reduction range across TensorCores when it divides evenly
    # (2 TCs on v7x; a size-1 or size-2 parallel axis is harmless on v5e/v6e).
    num_splits = 2 if total_steps % 2 == 0 else 1
    steps = total_steps // num_splits

    # Two contiguous (B, D) streams instead of one strided (2, tb, D) block.
    a = logits[0]
    b = logits[1]

    kernel = functools.partial(_siam_invar_partial_kernel, m=float(m))

    block_bytes = tb * D * 4
    vmem_limit = min(64 * 1024 * 1024,
                     max(32 * 1024 * 1024, 6 * block_bytes))

    in_map = lambda c, i: (c * steps + i, 0)

    partials = pl.pallas_call(
        kernel,
        out_shape=jax.ShapeDtypeStruct((num_splits, 8, D), jnp.float32),
        grid_spec=pltpu.PrefetchScalarGridSpec(
            num_scalar_prefetch=0,
            grid=(num_splits, steps),
            in_specs=[
                pl.BlockSpec((tb, D), in_map),
                pl.BlockSpec((tb, D), in_map),
            ],
            out_specs=pl.BlockSpec((1, 8, D), lambda c, i: (c, 0, 0)),
        ),
        compiler_params=pltpu.CompilerParams(
            dimension_semantics=("parallel", "arbitrary"),
            vmem_limit_bytes=vmem_limit,
        ),
        cost_estimate=pl.CostEstimate(
            flops=2 * B * D,
            transcendentals=0,
            bytes_accessed=2 * B * D * 4 + num_splits * 8 * D * 4,
        ),
    )(a, b)

    # Tiny epilogue: cross-lane/sublane reduce of the (num_splits, 8, D)
    # partial sums and the mean scaling.
    return jnp.sum(partials) * jnp.float32(1.0 / (B * D))


if __name__ == "__main__":
    key = jax.random.PRNGKey(0)
    B, D = 16, 128
    m = 0.5  # margin hyperparameter (module __init__ arg)

    logits = jax.random.normal(key, (2, B, D), dtype=jnp.float32)

    loss = jax.block_until_ready(siam_invar_loss(logits, m))

    # pure-JAX reference
    ref = jnp.mean(jnp.clip(m + (logits[0] - logits[1]), 0.0))
    assert jnp.allclose(loss, ref, rtol=1e-6, atol=1e-6), (loss, ref)

    print("KERNEL_OK")
</pallas_src>

<mosaic_0001>
module attributes {stable_mosaic.version = 11 : i64} {
  func.func @_siam_invar_partial_kernel(%arg0: i32, %arg1: i32, %arg2: memref<16x128xf32, #tpu.memory_space<vmem>>, %arg3: memref<16x128xf32, #tpu.memory_space<vmem>>, %arg4: memref<1x8x128xf32, #tpu.memory_space<vmem>>) attributes {dimension_semantics = [#tpu.dimension_semantics<parallel>, #tpu.dimension_semantics<arbitrary>], iteration_bounds = array<i64: 1, 1>, scalar_prefetch = 0 : i64, scratch_operands = 0 : i64, tpu.core_type = #tpu.core_type<tc>, window_params = [{transform_indices = @transform_0, window_bounds = array<i64: 16, 128>}, {transform_indices = @transform_1, window_bounds = array<i64: 16, 128>}, {transform_indices = @transform_2, window_bounds = array<i64: 1, 8, 128>}]} {
    %c0_i32 = arith.constant 0 : i32
    %0 = arith.cmpi eq, %arg1, %c0_i32 : i32
    %1 = arith.extui %0 : i1 to i32
    %c0_i32_0 = arith.constant 0 : i32
    %2 = arith.cmpi ne, %1, %c0_i32_0 : i32
    scf.if %2 {
      %cst_12 = arith.constant 0.000000e+00 : f32
      %18 = vector.broadcast %cst_12 : f32 to vector<1x8x128xf32>
      %c0_13 = arith.constant 0 : index
      %c0_14 = arith.constant 0 : index
      %c0_15 = arith.constant 0 : index
      %19 = vector.load %arg4[%c0_13, %c0_14, %c0_15] : memref<1x8x128xf32, #tpu.memory_space<vmem>>, vector<1x8x128xf32>
      tpu.vector_store %arg4[%c0_13, %c0_14, %c0_15], %18 {strides = array<i32>} : memref<1x8x128xf32, #tpu.memory_space<vmem>>, vector<1x8x128xf32>,
    } else {
    }
    %c0 = arith.constant 0 : index
    %c0_1 = arith.constant 0 : index
    %3 = vector.load %arg2[%c0, %c0_1] : memref<16x128xf32, #tpu.memory_space<vmem>>, vector<16x128xf32>
    %c0_2 = arith.constant 0 : index
    %c0_3 = arith.constant 0 : index
    %4 = vector.load %arg3[%c0_2, %c0_3] : memref<16x128xf32, #tpu.memory_space<vmem>>, vector<16x128xf32>
    %5 = arith.subf %3, %4 : vector<16x128xf32>
    %cst = arith.constant 5.000000e-01 : f32
    %6 = vector.broadcast %cst : f32 to vector<16x128xf32>
    %7 = arith.addf %6, %5 : vector<16x128xf32>
    %cst_4 = arith.constant 0.000000e+00 : f32
    %8 = vector.broadcast %cst_4 : f32 to vector<16x128xf32>
    %9 = arith.maximumf %7, %8 : vector<16x128xf32>
    %10 = vector.shape_cast %9 : vector<16x128xf32> to vector<2x8x128xf32>
    %cst_5 = arith.constant dense<0.000000e+00> : vector<8x128xf32>
    %11 = vector.multi_reduction <add>, %10, %cst_5 [0] : vector<2x8x128xf32> to vector<8x128xf32>
    %c0_6 = arith.constant 0 : index
    %c0_7 = arith.constant 0 : index
    %c0_8 = arith.constant 0 : index
    %12 = vector.load %arg4[%c0_6, %c0_7, %c0_8] : memref<1x8x128xf32, #tpu.memory_space<vmem>>, vector<1x8x128xf32>
    %13 = vector.shape_cast %12 : vector<1x8x128xf32> to vector<8x128xf32>
    %14 = arith.addf %13, %11 : vector<8x128xf32>
    %c0_9 = arith.constant 0 : index
    %c0_10 = arith.constant 0 : index
    %c0_11 = arith.constant 0 : index
    %15 = vector.load %arg4[%c0_9, %c0_10, %c0_11] : memref<1x8x128xf32, #tpu.memory_space<vmem>>, vector<1x8x128xf32>
    %16 = vector.shape_cast %15 : vector<1x8x128xf32> to vector<8x128xf32>
    %17 = vector.shape_cast %14 : vector<8x128xf32> to vector<1x8x128xf32>
    tpu.vector_store %arg4[%c0_9, %c0_10, %c0_11], %17 {strides = array<i32>} : memref<1x8x128xf32, #tpu.memory_space<vmem>>, vector<1x8x128xf32>,
    return
  }
  func.func @transform_0(%arg0: i32, %arg1: i32) -> (i32, i32) {
    %c1_i32 = arith.constant 1 : i32
    %0 = arith.muli %arg0, %c1_i32 : i32
    %1 = arith.addi %0, %arg1 : i32
    %c0_i32 = arith.constant 0 : i32
    %c0_i32_0 = arith.constant 0 : i32
    return %1, %c0_i32 : i32, i32
  }
  func.func @transform_1(%arg0: i32, %arg1: i32) -> (i32, i32) {
    %c1_i32 = arith.constant 1 : i32
    %0 = arith.muli %arg0, %c1_i32 : i32
    %1 = arith.addi %0, %arg1 : i32
    %c0_i32 = arith.constant 0 : i32
    %c0_i32_0 = arith.constant 0 : i32
    return %1, %c0_i32 : i32, i32
  }
  func.func @transform_2(%arg0: i32, %arg1: i32) -> (i32, i32, i32) {
    %c0_i32 = arith.constant 0 : i32
    %c0_i32_0 = arith.constant 0 : i32
    %c0_i32_1 = arith.constant 0 : i32
    return %arg0, %c0_i32, %c0_i32_0 : i32, i32, i32
  }
}

</mosaic_0001>

<bundles_post_ra>
// kernel: tpu_custom_call.1
= control target key start
LH: loop header
LB: loop body
LE: loop exit
PB: predicated region body
PF: predicated region fallthrough
CT: control target
= control target key end

     0   :  { %7 = vsyncpa [#allocation3], 0  ;;  %s206_s0 = inlined_call_operand.hbm [shape: f32[16,128], index: 0, kind: input, shape index: {}]   ;;  %s207_s1 = inlined_call_operand.hbm [shape: f32[16,128], index: 1, kind: input, shape index: {}]   ;;  %s208_s2 = inlined_call_operand.hbm [shape: f32[1,8,128], index: 2, kind: output, shape index: {}]  }
   0x1   :  { %8 = vsyncpa [#allocation6], 0 }
   0x2   :  { %9 = vsyncpa [#allocation4], 0  ;;  %s18_s11 = sshll.u32 %s206_s0, 4  ;;  %s177_s12 = smov [#allocation2]   ;;  %s19_s11 = int_to_ptr.hbm [resolvable:$true] %s18_s11 }
   0x3   :  { %s20_s13 = sshll.u32 %s177_s12, 4  ;;  %s35_s16 = sshll.u32 %s207_s1, 4  ;;  %s21_s13 = int_to_ptr.vmem [resolvable:$true] %s20_s13  ;;  %s36_s16 = int_to_ptr.hbm [resolvable:$true] %s35_s16 }
   0x4   :  { %s178_s17 = smov 128   ;;  %s179_s18 = smov 8  }
   0x5   :  { %26 = dma.hbm_to_vmem [thread:$0]  %s19_s11, 256, %s21_s13, [#allocation3], %s178_s17, %s178_s17, %s179_s18  }
   0x6   :  { %s180_s19 = smov [#allocation5]  }
   0x7   :  { %s37_s20 = sshll.u32 %s180_s19, 4  ;;  %s38_s20 = int_to_ptr.vmem [resolvable:$true] %s37_s20 }
   0x8   :  { %43 = dma.hbm_to_vmem [thread:$0]  %s36_s16, 256, %s38_s20, [#allocation6], %s178_s17, %s178_s17, %s179_s18  }
   0x9   :  { %171 = dma.done.wait [#allocation3], 256  }
   0xa   :  { %172 = vsyncadd [#allocation3], 4294967040 }
   0xb   :  { %173 = dma.done.wait [#allocation6], 256  }
   0xc   :  { %174 = vsyncadd [#allocation6], 4294967040  ;;  %v61_v0 = vld [vmem:[#allocation2] sm:$0xff]  ;;  %v62_v1 = vld [vmem:[#allocation2 + $0x8] sm:$0xff]  ;;  %s181_s0 = smov [#allocation7]   ;;  %s82_s23 = sshll.u32 %s208_s2, 4  ;;  %s83_s23 = int_to_ptr.hbm [resolvable:$true] %s82_s23 }
   0xd   :  { %v63_v2 = vld [vmem:[#allocation5] sm:$0xff]  ;;  %v64_v3 = vld [vmem:[#allocation5 + $0x8] sm:$0xff]  ;;  %s80_s1 = sshll.u32 %s181_s0, 4  ;;  %s81_s1 = int_to_ptr.vmem [resolvable:$true] %s80_s1 }
   0xe   :  { %v65_v4 = vsub.f32 %v61_v0, %v63_v2  ;;  %v66_v5 = vsub.f32 %v62_v1, %v64_v3 }
  0x10   :  { %v67_v6 = vadd.f32 0.5, %v65_v4  ;;  %v68_v7 = vadd.f32 0.5, %v66_v5 }
  0x12   :  { %v69_v8 = vmax.f32 %v67_v6, 0.0  ;;  %v70_v9 = vmax.f32 %v68_v7, 0.0 }
  0x14   :  { %v71_v10 = vadd.f32 %v70_v9, %v69_v8 }
  0x16   :  { %74 = vst [vmem:[#allocation7] sm:$0xff] %v71_v10 }
  0x17   :  { %85 = dma.vmem_to_hbm [thread:$0]  %s81_s1, 128, %s83_s23, [#allocation4]  }
  0x18   :  { %175 = dma.done.wait [#allocation4], 128  }
  0x19   :  { %176 = vsyncadd [#allocation4], 4294967168 }
  0x1a   :  { %90 = vsyncpa [#allocation3], 1 }
  0x1b   :  { %91 = vsyncpa [#allocation6], 1 }
  0x1c   :  { %92 = vsyncpa [#allocation4], 1 }

</bundles_post_ra>
